<compile_context>
chip_gen: v7x
topology: tpu7x:2x2x1
jax: 0.10.0
libtpu: 0.0.40
codegen_flags: <defaults>
</compile_context>

<pallas_src>
import functools

import jax
import jax.numpy as jnp
from jax.experimental import pallas as pl
from jax.experimental.pallas import tpu as pltpu


def _round_up(v, m):
    return (v + m - 1) // m * m


def _residual_add_kernel(x_ref, w_ref, b_ref, r_ref, o_ref, acc_ref):
    # x_ref : (tile_t, tile_k) f32   -- matmul operand (cast to bf16 here)
    # w_ref : (tile_k, tile_n) bf16  -- weight tile (cast once in wrapper)
    # b_ref : (1, tile_n)      f32   -- bias row tile
    # r_ref : (tile_t, tile_n) f32   -- residual tile (same coords as output)
    # o_ref : (tile_t, tile_n) f32
    # acc_ref: (tile_t, tile_n) f32 VMEM scratch accumulator
    k = pl.program_id(2)

    @pl.when(k == 0)
    def _():
        acc_ref[...] = jnp.zeros_like(acc_ref)

    acc_ref[...] += jnp.dot(
        x_ref[...].astype(jnp.bfloat16),
        w_ref[...],
        preferred_element_type=jnp.float32,
    )

    @pl.when(k == pl.num_programs(2) - 1)
    def _():
        h = acc_ref[...] + b_ref[...]
        # tanh-approx GELU -> EUP path (essentially free next to MXU/VPU work).
        h = jax.nn.gelu(h, approximate=True)
        # fused residual add (the actual ResidualAdd semantics).
        o_ref[...] = (h + r_ref[...]).astype(o_ref.dtype)


@functools.partial(jax.jit, static_argnames=("tile_tokens", "tile_n", "tile_k"))
def residual_add(x, w, b, *, tile_tokens=512, tile_n=256, tile_k=256):
    """out = gelu(x @ w + b) + x, fused in one Pallas kernel.

    x: (B, S, D) float32
    w: (D, D)    float32
    b: (D,)      float32
    """
    B, S, D = x.shape
    tokens = B * S

    # ---- shape hygiene: lane-dense hidden dim, sublane-aligned token tiles ----
    Dp = _round_up(D, 128)                      # lane dim multiple of 128
    tile_n = min(tile_n, Dp)
    tile_k = min(tile_k, Dp)
    if Dp % tile_n:
        tile_n = 128                            # 128 always divides Dp
    if Dp % tile_k:
        tile_k = 128

    tile_t = _round_up(min(tile_tokens, _round_up(tokens, 8)), 8)
    Tp = _round_up(tokens, tile_t)              # no ragged final token block

    x2 = x.reshape(tokens, D)
    x2p = jnp.pad(x2, ((0, Tp - tokens), (0, Dp - D)))
    # Cast W once here: halves weight HBM traffic + VMEM residency, bf16 MXU.
    wp = jnp.pad(w, ((0, Dp - D), (0, Dp - D))).astype(jnp.bfloat16)
    bp = jnp.pad(b, (0, Dp - D)).reshape(1, Dp).astype(jnp.float32)

    grid = (Tp // tile_t, Dp // tile_n, Dp // tile_k)

    out2 = pl.pallas_call(
        _residual_add_kernel,
        out_shape=jax.ShapeDtypeStruct((Tp, Dp), x.dtype),
        grid_spec=pltpu.PrefetchScalarGridSpec(
            num_scalar_prefetch=0,
            grid=grid,
            in_specs=[
                # x as matmul operand, tiled over K (reduction)
                pl.BlockSpec((tile_t, tile_k), lambda t, n, k: (t, k)),
                # weight tile
                pl.BlockSpec((tile_k, tile_n), lambda t, n, k: (k, n)),
                # bias row tile
                pl.BlockSpec((1, tile_n), lambda t, n, k: (0, n)),
                # x again as the residual, tiled like the output (constant in k
                # -> fetched once per (t, n), not per K step)
                pl.BlockSpec((tile_t, tile_n), lambda t, n, k: (t, n)),
            ],
            out_specs=pl.BlockSpec((tile_t, tile_n), lambda t, n, k: (t, n)),
            scratch_shapes=[pltpu.VMEM((tile_t, tile_n), jnp.float32)],
        ),
        compiler_params=pltpu.CompilerParams(
            dimension_semantics=("parallel", "parallel", "arbitrary"),
            vmem_limit_bytes=64 * 1024 * 1024,
        ),
    )(x2p, wp, bp, x2p)

    return out2[:tokens, :D].reshape(B, S, D)


if __name__ == "__main__":
    key = jax.random.PRNGKey(0)
    kx, kw, kb = jax.random.split(key, 3)

    B, S, D = 2, 8, 32
    x = jax.random.normal(kx, (B, S, D), dtype=jnp.float32)
    # deterministic synthetic parameters for fn = Linear(D, D) -> GELU
    # TODO(synk): the PyTorch ResidualAdd wraps an arbitrary `fn`; a concrete
    # linear+GELU is used here so there is real compute to fuse.
    w = jax.random.normal(kw, (D, D), dtype=jnp.float32) * 0.1
    b = jax.random.normal(kb, (D,), dtype=jnp.float32) * 0.1

    out = residual_add(x, w, b)
    jax.block_until_ready(out)

    # Reference check (ResidualAdd semantics): fn(x) + x.
    # Kernel matmul runs in bf16 on the MXU, so compare with loose tolerance.
    ref = jax.nn.gelu(x @ w + b, approximate=True) + x
    assert out.shape == ref.shape
    assert jnp.allclose(out, ref, atol=5e-2, rtol=5e-2), "mismatch vs reference"

    print("KERNEL_OK")
</pallas_src>

<mosaic_0001>
module attributes {stable_mosaic.version = 11 : i64} {
  func.func @_residual_add_kernel(%arg0: i32, %arg1: i32, %arg2: i32, %arg3: memref<16x128xf32, #tpu.memory_space<vmem>>, %arg4: memref<128x128xbf16, #tpu.memory_space<vmem>>, %arg5: memref<1x128xf32, #tpu.memory_space<vmem>>, %arg6: memref<16x128xf32, #tpu.memory_space<vmem>>, %arg7: memref<16x128xf32, #tpu.memory_space<vmem>>, %arg8: memref<16x128xf32, #tpu.memory_space<vmem>>) attributes {dimension_semantics = [#tpu.dimension_semantics<parallel>, #tpu.dimension_semantics<parallel>, #tpu.dimension_semantics<arbitrary>], iteration_bounds = array<i64: 1, 1, 1>, scalar_prefetch = 0 : i64, scratch_operands = 1 : i64, tpu.core_type = #tpu.core_type<tc>, window_params = [{transform_indices = @transform_0, window_bounds = array<i64: 16, 128>}, {transform_indices = @transform_1, window_bounds = array<i64: 128, 128>}, {transform_indices = @transform_2, window_bounds = array<i64: 1, 128>}, {transform_indices = @transform_3, window_bounds = array<i64: 16, 128>}, {transform_indices = @transform_4, window_bounds = array<i64: 16, 128>}]} {
    %c0_i32 = arith.constant 0 : i32
    %0 = arith.cmpi eq, %arg2, %c0_i32 : i32
    %1 = arith.extui %0 : i1 to i32
    %c0_i32_0 = arith.constant 0 : i32
    %2 = arith.cmpi ne, %1, %c0_i32_0 : i32
    scf.if %2 {
      %cst_10 = arith.constant 0.000000e+00 : f32
      %13 = vector.broadcast %cst_10 : f32 to vector<16x128xf32>
      %c0_11 = arith.constant 0 : index
      %c0_12 = arith.constant 0 : index
      %14 = vector.load %arg8[%c0_11, %c0_12] : memref<16x128xf32, #tpu.memory_space<vmem>>, vector<16x128xf32>
      tpu.vector_store %arg8[%c0_11, %c0_12], %13 {strides = array<i32>} : memref<16x128xf32, #tpu.memory_space<vmem>>, vector<16x128xf32>,
    } else {
    }
    %c0 = arith.constant 0 : index
    %c0_1 = arith.constant 0 : index
    %3 = vector.load %arg8[%c0, %c0_1] : memref<16x128xf32, #tpu.memory_space<vmem>>, vector<16x128xf32>
    %c0_2 = arith.constant 0 : index
    %c0_3 = arith.constant 0 : index
    %4 = vector.load %arg3[%c0_2, %c0_3] : memref<16x128xf32, #tpu.memory_space<vmem>>, vector<16x128xf32>
    %5 = arith.truncf %4 : vector<16x128xf32> to vector<16x128xbf16>
    %c0_4 = arith.constant 0 : index
    %c0_5 = arith.constant 0 : index
    %6 = vector.load %arg4[%c0_4, %c0_5] : memref<128x128xbf16, #tpu.memory_space<vmem>>, vector<128x128xbf16>
    %cst = arith.constant dense<0.000000e+00> : vector<16x128xf32>
    %7 = tpu.matmul %5, %6, %cst {dimension_numbers = #tpu.dot_dimension_numbers<[1], [0], [0], [1], [0, 0, 1, 1], [], []>} : vector<16x128xbf16>, vector<128x128xbf16>, vector<16x128xf32> -> vector<16x128xf32>
    %8 = arith.addf %3, %7 : vector<16x128xf32>
    %c0_6 = arith.constant 0 : index
    %c0_7 = arith.constant 0 : index
    %9 = vector.load %arg8[%c0_6, %c0_7] : memref<16x128xf32, #tpu.memory_space<vmem>>, vector<16x128xf32>
    tpu.vector_store %arg8[%c0_6, %c0_7], %8 {strides = array<i32>} : memref<16x128xf32, #tpu.memory_space<vmem>>, vector<16x128xf32>,
    %c0_i32_8 = arith.constant 0 : i32
    %10 = arith.cmpi eq, %arg2, %c0_i32_8 : i32
    %11 = arith.extui %10 : i1 to i32
    %c0_i32_9 = arith.constant 0 : i32
    %12 = arith.cmpi ne, %11, %c0_i32_9 : i32
    scf.if %12 {
      %c0_10 = arith.constant 0 : index
      %c0_11 = arith.constant 0 : index
      %13 = vector.load %arg8[%c0_10, %c0_11] : memref<16x128xf32, #tpu.memory_space<vmem>>, vector<16x128xf32>
      %c0_12 = arith.constant 0 : index
      %c0_13 = arith.constant 0 : index
      %14 = vector.load %arg5[%c0_12, %c0_13] : memref<1x128xf32, #tpu.memory_space<vmem>>, vector<1x128xf32>
      %15 = vector.broadcast %14 : vector<1x128xf32> to vector<16x128xf32>
      %16 = arith.addf %13, %15 : vector<16x128xf32>
      %17 = arith.mulf %16, %16 : vector<16x128xf32>
      %18 = arith.mulf %16, %17 : vector<16x128xf32>
      %cst_14 = arith.constant 4.471500e-02 : f32
      %19 = vector.broadcast %cst_14 : f32 to vector<16x128xf32>
      %20 = arith.mulf %19, %18 : vector<16x128xf32>
      %21 = arith.addf %16, %20 : vector<16x128xf32>
      %cst_15 = arith.constant 0.797884583 : f32
      %22 = vector.broadcast %cst_15 : f32 to vector<16x128xf32>
      %23 = arith.mulf %22, %21 : vector<16x128xf32>
      %24 = math.tanh %23 : vector<16x128xf32>
      %cst_16 = arith.constant 1.000000e+00 : f32
      %25 = vector.broadcast %cst_16 : f32 to vector<16x128xf32>
      %26 = arith.addf %25, %24 : vector<16x128xf32>
      %cst_17 = arith.constant 5.000000e-01 : f32
      %27 = vector.broadcast %cst_17 : f32 to vector<16x128xf32>
      %28 = arith.mulf %27, %26 : vector<16x128xf32>
      %29 = arith.mulf %16, %28 : vector<16x128xf32>
      %c0_18 = arith.constant 0 : index
      %c0_19 = arith.constant 0 : index
      %30 = vector.load %arg6[%c0_18, %c0_19] : memref<16x128xf32, #tpu.memory_space<vmem>>, vector<16x128xf32>
      %31 = arith.addf %29, %30 : vector<16x128xf32>
      %c0_20 = arith.constant 0 : index
      %c0_21 = arith.constant 0 : index
      %32 = vector.load %arg7[%c0_20, %c0_21] : memref<16x128xf32, #tpu.memory_space<vmem>>, vector<16x128xf32>
      tpu.vector_store %arg7[%c0_20, %c0_21], %31 {strides = array<i32>} : memref<16x128xf32, #tpu.memory_space<vmem>>, vector<16x128xf32>,
    } else {
    }
    return
  }
  func.func @transform_0(%arg0: i32, %arg1: i32, %arg2: i32) -> (i32, i32) {
    %c0_i32 = arith.constant 0 : i32
    return %arg0, %arg2 : i32, i32
  }
  func.func @transform_1(%arg0: i32, %arg1: i32, %arg2: i32) -> (i32, i32) {
    %c0_i32 = arith.constant 0 : i32
    return %arg2, %arg1 : i32, i32
  }
  func.func @transform_2(%arg0: i32, %arg1: i32, %arg2: i32) -> (i32, i32) {
    %c0_i32 = arith.constant 0 : i32
    %c0_i32_0 = arith.constant 0 : i32
    return %c0_i32, %arg1 : i32, i32
  }
  func.func @transform_3(%arg0: i32, %arg1: i32, %arg2: i32) -> (i32, i32) {
    %c0_i32 = arith.constant 0 : i32
    return %arg0, %arg1 : i32, i32
  }
  func.func @transform_4(%arg0: i32, %arg1: i32, %arg2: i32) -> (i32, i32) {
    %c0_i32 = arith.constant 0 : i32
    return %arg0, %arg1 : i32, i32
  }
}

</mosaic_0001>

<bundles_post_ra>
// kernel: residual_add.1
= control target key start
LH: loop header
LB: loop body
LE: loop exit
PB: predicated region body
PF: predicated region fallthrough
CT: control target
= control target key end

     0   :  { %9 = vsyncpa [#allocation4], 0  ;;  %s540_s0 = inlined_call_operand.hbm [shape: f32[16,128], index: 0, kind: input, shape index: {}, may-alias: {0,3}]   ;;  %s541_s1 = inlined_call_operand.hbm [shape: bf16[128,128], index: 1, kind: input, shape index: {}]   ;;  %s542_s2 = inlined_call_operand.hbm [shape: f32[1,128], index: 2, kind: input, shape index: {}]   ;;  %s543_s3 = inlined_call_operand.hbm [shape: f32[16,128], index: 3, kind: input, shape index: {}, may-alias: {0,3}]   ;;  %s544_s4 = inlined_call_operand.hbm [shape: f32[16,128], index: 4, kind: output, shape index: {}]  }
   0x1   :  { %10 = vsyncpa [#allocation7], 0 }
   0x2   :  { %11 = vsyncpa [#allocation10], 0 }
   0x3   :  { %12 = vsyncpa [#allocation5], 0  ;;  %s428_s15 = smov [#allocation6]   ;;  %s310_s19 = scalar_lea.hbm %s541_s1, 1024 }
   0x4   :  { %s30_s16 = sshll.u32 %s428_s15, 4  ;;  %p311_p0 = scmp.ne.s32.totalorder %s541_s1, %s310_s19  ;;  %s31_s16 = int_to_ptr.vmem [resolvable:$true] %s30_s16 }
   0x5   :  { %p314_p1 = scmp.lt.u32.totalorder %s310_s19, %s541_s1 }
   0x7   :  { %p316_p2 = pnand %p314_p1, %p311_p0 }
   0x9   :  { %319 = shalt.err (!%p316_p2)
}
   0xa   :  { %s320_s24 = scalar_lea.vmem %s31_s16, 1024  ;;  %p325_p4 = scmp.lt.s32.totalorder %s31_s16, %s31_s16 }
   0xb   :  { %p321_p3 = scmp.ne.s32.totalorder %s31_s16, %s320_s24  ;;  %p326_p5 = scmp.lt.s32.totalorder %s320_s24, %s320_s24 }
   0xd   :  { %p327_p6 = por %p326_p5, %p325_p4 }
   0xf   :  { %p328_p7 = pnand %p327_p6, %p321_p3 }
  0x11   :  { %331 = shalt.err (!%p328_p7)
}
  0x12   :  { %s429_s25 = smov 64   ;;  %s430_s26 = smov 4  }
  0x13   :  { %36 = dma.hbm_to_vmem [thread:$0]  %s541_s1, 1024, %s31_s16, [#allocation7], %s429_s25, %s429_s25, %s430_s26  }
  0x14   :  { %s431_s29 = smov [#allocation3]   ;;  %s332_s7 = scalar_lea.hbm %s540_s0, 256 }
  0x15   :  { %s18_s30 = sshll.u32 %s431_s29, 4  ;;  %p333_p8 = scmp.ne.s32.totalorder %s540_s0, %s332_s7  ;;  %s19_s30 = int_to_ptr.vmem [resolvable:$true] %s18_s30 }
  0x16   :  { %p336_p9 = scmp.lt.u32.totalorder %s332_s7, %s540_s0 }
  0x18   :  { %p338_p10 = pnand %p336_p9, %p333_p8 }
  0x1a   :  { %341 = shalt.err (!%p338_p10)
}
  0x1b   :  { %s342_s12 = scalar_lea.vmem %s19_s30, 256  ;;  %p347_p12 = scmp.lt.s32.totalorder %s19_s30, %s19_s30 }
  0x1c   :  { %p343_p11 = scmp.ne.s32.totalorder %s19_s30, %s342_s12  ;;  %p348_p13 = scmp.lt.s32.totalorder %s342_s12, %s342_s12 }
  0x1e   :  { %p349_p0 = por %p348_p13, %p347_p12 }
  0x20   :  { %p350_p1 = pnand %p349_p0, %p343_p11 }
  0x22   :  { %353 = shalt.err (!%p350_p1)
}
  0x23   :  { %s432_s1 = smov 128   ;;  %s433_s13 = smov 8  }
  0x24   :  { %24 = dma.hbm_to_vmem [thread:$0]  %s540_s0, 256, %s19_s30, [#allocation4], %s432_s1, %s432_s1, %s433_s13  }
  0x25   :  { %s434_s16 = smov [#allocation8]   ;;  %s435_s18 = smov [#allocation9]  }
  0x26   :  { %s43_s17 = sshll.u32 %s434_s16, 4  ;;  %s52_s19 = sshll.u32 %s435_s18, 4  ;;  %s44_s17 = int_to_ptr.vmem [resolvable:$true] %s43_s17  ;;  %s491_s19 = int_to_ptr.vmem [resolvable:$true] %s52_s19 }
  0x27   :  { %s354_s22 = scalar_lea.hbm %s542_s2, 16 }
  0x28   :  { %p355_p2 = scmp.ne.s32.totalorder %s542_s2, %s354_s22  ;;  %p358_p3 = scmp.lt.u32.totalorder %s354_s22, %s542_s2 }
  0x2a   :  { %p360_p4 = pnand %p358_p3, %p355_p2 }
  0x2c   :  { %363 = shalt.err (!%p360_p4)
}
  0x2d   :  { %s364_s0 = scalar_lea.vmem %s44_s17, 16  ;;  %s368_s27 = scalar_lea.vmem %s44_s17, 32 }
  0x2e   :  { %p365_p5 = scmp.ne.s32.totalorder %s44_s17, %s364_s0  ;;  %p369_p6 = scmp.lt.s32.totalorder %s44_s17, %s44_s17 }
  0x2f   :  { %p370_p7 = scmp.lt.s32.totalorder %s368_s27, %s364_s0 }
  0x31   :  { %p371_p8 = por %p370_p7, %p369_p6 }
  0x33   :  { %p372_p9 = pnand %p371_p8, %p365_p5 }
  0x35   :  { %375 = shalt.err (!%p372_p9)
}
  0x36   :  { %46 = dma.hbm_to_vmem [thread:$0]  %s542_s2, 16, %s44_s17, [#allocation7]  }
  0x37   :  { %s376_s6 = scalar_lea.hbm %s543_s3, 256 }
  0x38   :  { %p377_p10 = scmp.ne.s32.totalorder %s543_s3, %s376_s6  ;;  %p380_p11 = scmp.lt.u32.totalorder %s376_s6, %s543_s3 }
  0x3a   :  { %p382_p12 = pnand %p380_p11, %p377_p10 }
  0x3c   :  { %385 = shalt.err (!%p382_p12)
}
  0x3d   :  { %s386_s11 = scalar_lea.vmem %s491_s19, 256  ;;  %p391_p0 = scmp.lt.s32.totalorder %s491_s19, %s491_s19 }
  0x3e   :  { %p387_p13 = scmp.ne.s32.totalorder %s491_s19, %s386_s11  ;;  %p392_p1 = scmp.lt.s32.totalorder %s386_s11, %s386_s11 }
  0x40   :  { %p393_p2 = por %p392_p1, %p391_p0 }
  0x42   :  { %p394_p3 = pnand %p393_p2, %p387_p13 }
  0x44   :  { %397 = shalt.err (!%p394_p3)
}
  0x45   :  { %58 = dma.hbm_to_vmem [thread:$0]  %s543_s3, 256, %s491_s19, [#allocation10], %s432_s1, %s432_s1, %s433_s13  }
  0x46   :  { %420 = dma.done.wait [#allocation4], 256  }
  0x47   :  { %421 = vsyncadd [#allocation4], 4294967040 }
  0x48   :  { %422 = dma.done.wait [#allocation7], 1040  }
  0x49   :  { %423 = vsyncadd [#allocation7], 4294966256 }
  0x4a   :  { %424 = dma.done.wait [#allocation10], 256  }
  0x4b   :  { %425 = vsyncadd [#allocation10], 4294967040  ;;  %v436_v0 = vmov 0.0   ;;  %vm437_vm0 = vmmov 0   ;;  %v298_v1 = vld [vmem:[#allocation6] sm:$0xff]   ;;  %v299_v2 = vld [vmem:[#allocation6 + $0x8] sm:$0xff]  }
  0x4c   :  { %267 = vmatprep.subr.bf16.mxu0 %v436_v0  ;;  %283 = vmatprep.mubr.msk.bf16.mxu0 %vm437_vm0, %v436_v0  ;;  %v300_v3 = vld [vmem:[#allocation6 + $0x10] sm:$0xff]   ;;  %v301_v4 = vld [vmem:[#allocation6 + $0x18] sm:$0xff]   ;;  %v302_v5 = vld [vmem:[#allocation6 + $0x20] sm:$0xff]   ;;  %s438_s3 = smov [#allocation11]  }
  0x4d   :  { %268 = vmatpush3.bf16.msra.mxu0 %v298_v1  ;;  %v303_v6 = vld [vmem:[#allocation6 + $0x28] sm:$0xff]   ;;  %v304_v7 = vld [vmem:[#allocation6 + $0x30] sm:$0xff]   ;;  %v305_v8 = vld [vmem:[#allocation6 + $0x38] sm:$0xff]   ;;  %s235_s14 = sshll.u32 %s438_s3, 4  ;;  %s236_s14 = int_to_ptr.vmem [resolvable:$true] %s235_s14 }
  0x4e   :  { %269 = vmatprep.subr.bf16.mxu0 %v436_v0  ;;  %v80_v9 = vld [vmem:[#allocation3] sm:$0xff]  ;;  %v81_v10 = vld [vmem:[#allocation3 + $0x8] sm:$0xff]  ;;  %v257_v12 = vld [vmem:[#allocation8] ss:$0 sm:$0xff]  ;;  %s398_s15 = scalar_lea.vmem %s236_s14, 256  ;;  %p403_p5 = scmp.lt.s32.totalorder %s236_s14, %s236_s14 }
  0x4f   :  { %v82_v11 = vpack.c.bf16 %v81_v10, %v80_v9  ;;  %v224_v34 = vld [vmem:[#allocation9] sm:$0xff]  ;;  %v225_v37 = vld [vmem:[#allocation9 + $0x8] sm:$0xff]  ;;  %p399_p4 = scmp.ne.s32.totalorder %s236_s14, %s398_s15  ;;  %p404_p6 = scmp.lt.s32.totalorder %s398_s15, %s398_s15 }
  0x51   :  { %270 = vmatpush3.bf16.msra.mxu0 %v299_v2  ;;  %p405_p7 = por %p404_p6, %p403_p5 }
  0x52   :  { %271 = vmatprep.subr.bf16.mxu0 %v436_v0 }
  0x53   :  { %p406_p8 = pnand %p405_p7, %p399_p4 }
  0x55   :  { %272 = vmatpush3.bf16.msra.mxu0 %v300_v3 }
  0x56   :  { %273 = vmatprep.subr.bf16.mxu0 %v436_v0 }
  0x59   :  { %274 = vmatpush3.bf16.msra.mxu0 %v301_v4 }
  0x5a   :  { %275 = vmatprep.subr.bf16.mxu0 %v436_v0 }
  0x5d   :  { %276 = vmatpush3.bf16.msra.mxu0 %v302_v5 }
  0x5e   :  { %277 = vmatprep.subr.bf16.mxu0 %v436_v0 }
  0x61   :  { %278 = vmatpush3.bf16.msra.mxu0 %v303_v6 }
  0x62   :  { %279 = vmatprep.subr.bf16.mxu0 %v436_v0 }
  0x65   :  { %280 = vmatpush3.bf16.msra.mxu0 %v304_v7 }
  0x66   :  { %281 = vmatprep.subr.bf16.mxu0 %v436_v0 }
  0x69   :  { %282 = vmatpush3.bf16.msra.mxu0 %v305_v8 }
  0x6c   :  { %284 = vmatmul.mubr.bf16.vlgmr.msra.gmra.mrb[0].mxu0 %v82_v11 }
 0x13f   :  { %v181_v13 = vpop.f32.mrb[0].mxu0 }
 0x140   :  { %v204_v14 = vadd.f32 %v257_v12, %v181_v13  ;;  %v285_v15 = vpop.f32.mrb[1].mxu0 }
 0x141   :  { %v184_v16 = vpop.f32.mrb[2].mxu0 }
 0x142   :  { %v206_v17 = vmul.f32 %v204_v14, %v204_v14  ;;  %v205_v18 = vadd.f32 %v257_v12, %v184_v16  ;;  %v286_v19 = vpop.f32.mrb[3].mxu0 }
 0x144   :  { %v208_v20 = vmul.f32 %v206_v17, %v204_v14  ;;  %v207_v21 = vmul.f32 %v205_v18, %v205_v18 }
 0x146   :  { %v210_v22 = vmul.f32 0.044715, %v208_v20  ;;  %v209_v23 = vmul.f32 %v207_v21, %v205_v18 }
 0x148   :  { %v212_v24 = vadd.f32 %v210_v22, %v204_v14  ;;  %v211_v25 = vmul.f32 0.044715, %v209_v23 }
 0x14a   :  { %v214_v26 = vmul.f32 0.7978846, %v212_v24  ;;  %v213_v27 = vadd.f32 %v211_v25, %v205_v18 }
 0x14c   :  { %306 = vtanh.f32 %v214_v26  ;;  %v215_v28 = vmul.f32 0.7978846, %v213_v27 }
 0x14e   :  { %308 = vtanh.f32 %v215_v28 }
 0x156   :  { %v307_v29 = vpop.eup %306 }
 0x157   :  { %v218_v30 = vadd.f32 1.0, %v307_v29 }
 0x158   :  { %v309_v31 = vpop.eup %308 }
 0x159   :  { %v219_v32 = vadd.f32 1.0, %v309_v31  ;;  %v220_v33 = vmul.f32 0.5, %v218_v30 }
 0x15b   :  { %v221_v35 = vmul.f32 0.5, %v219_v32  ;;  %v222_v36 = vmul.f32 %v220_v33, %v204_v14 }
 0x15d   :  { %v223_v38 = vmul.f32 %v221_v35, %v205_v18  ;;  %v226_v39 = vadd.f32 %v224_v34, %v222_v36 }
 0x15f   :  { %v227_v40 = vadd.f32 %v225_v37, %v223_v38  ;;  %228 = vst [vmem:[#allocation11] sm:$0xff] %v226_v39 }
 0x161   :  { %229 = vst [vmem:[#allocation11 + $0x8] sm:$0xff] %v227_v40 }
 0x162   :  { %409 = shalt.err (!%p406_p8)
}
 0x163   :  { %s410_s18 = scalar_lea.hbm %s544_s4, 256 }
 0x164   :  { %p411_p9 = scmp.ne.s32.totalorder %s544_s4, %s410_s18  ;;  %p414_p10 = scmp.lt.u32.totalorder %s410_s18, %s544_s4 }
 0x166   :  { %p416_p11 = pnand %p414_p10, %p411_p9 }
 0x168   :  { %419 = shalt.err (!%p416_p11)
}
 0x169   :  { %241 = dma.vmem_to_hbm [thread:$0]  %s236_s14, 256, %s544_s4, [#allocation5], %s432_s1, %s432_s1, %s433_s13  }
 0x16a   :  { %426 = dma.done.wait [#allocation5], 256  }
 0x16b   :  { %427 = vsyncadd [#allocation5], 4294967040 }
 0x16c   :  { %245 = vsyncpa [#allocation4], 1 }
 0x16d   :  { %246 = vsyncpa [#allocation7], 1 }
 0x16e   :  { %247 = vsyncpa [#allocation10], 1 }
 0x16f   :  { %248 = vsyncpa [#allocation5], 1 }

</bundles_post_ra>
